<compile_context>
chip_gen: v7x
topology: tpu7x:2x2x1
jax: 0.10.0
libtpu: 0.0.40
codegen_flags: <defaults>
</compile_context>

<pallas_src>
import functools

import numpy as np
import jax
import jax.numpy as jnp
from jax.experimental import pallas as pl
from jax.experimental.pallas import tpu as pltpu


def get_corr_joints(parts):
    num_joints = max(max(p) for p in parts) + 1
    res = []
    for i in range(num_joints):
        for j, part in enumerate(parts):
            if i in part:
                res.append(j)
                break
    return np.asarray(res, dtype=np.int32)


# --------------------------------------------------------------------------
# Fused single-pass kernel: grid=(N,), one (C, T*V) sample resident in VMEM.
# --------------------------------------------------------------------------
def _fused_kernel(x_ref, w1_ref, b1_ref, w2_ref, b2_ref, s2_ref, bias_ref,
                  g_ref, o_ref, *, inv_tv, P):
    x = x_ref[0].astype(jnp.float32)                        # (C, TV)

    # Global average pool per channel (column form keeps later matmuls clean).
    pooled = jnp.sum(x, axis=1, keepdims=True) * inv_tv     # (C, 1)

    # conv1 (+ folded BN1) + ReLU.
    h = jnp.dot(w1_ref[...], pooled, preferred_element_type=jnp.float32)
    h = jnp.maximum(h + b1_ref[...], 0.0)                   # (C4, 1)

    # conv2: one tiny dot per part -> (C, P) logits.  P is a Python int so
    # this loop is unrolled at trace time; all of this is microscopic next to
    # the HBM stream of x.
    cols = []
    for p in range(P):
        lp = jnp.dot(w2_ref[p], h, preferred_element_type=jnp.float32)
        cols.append(lp + b2_ref[p])                         # (C, 1)
    logits = jnp.concatenate(cols, axis=1)                  # (C, P)

    # Softmax over the P parts (last axis).
    m = jnp.max(logits, axis=1, keepdims=True)
    e = jnp.exp(logits - m)
    att = e / jnp.sum(e, axis=1, keepdims=True)             # (C, P)

    # Fold BN2 scale into the attention, then broadcast over T and gather the
    # per-joint part with ONE constant 0/1 matmul:
    #   a[c, t*V + v] = att[c, joints[v]] * s2[c]
    att_s = att * s2_ref[...]                               # (C, P)
    a = jnp.dot(att_s, g_ref[...],
                preferred_element_type=jnp.float32)         # (C, TV)

    # relu(bn(x*att) + x) = relu(x*(att*s2 + 1) + o2)
    y = x * (a + 1.0) + bias_ref[...]                       # bias: (C, 1)
    o_ref[0] = jnp.maximum(y, 0.0).astype(o_ref.dtype)


# --------------------------------------------------------------------------
# Fallback path (sample too large for VMEM): streaming pool kernel +
# XLA MLP/softmax glue + lane-dense fuse kernel.
# --------------------------------------------------------------------------
def _pool_kernel(x_ref, sum_ref, acc_ref, *, tv_total, tv_chunk):
    k = pl.program_id(1)

    @pl.when(k == 0)
    def _init():
        acc_ref[...] = jnp.zeros_like(acc_ref)

    x = x_ref[0].astype(jnp.float32)                        # (C, tv_chunk)
    if tv_total % tv_chunk != 0:                            # ragged tail only
        lane = jax.lax.broadcasted_iota(jnp.int32, x.shape, 1)
        x = jnp.where(k * tv_chunk + lane < tv_total, x, 0.0)
    acc_ref[...] += jnp.sum(x, axis=1, keepdims=True)       # (C, 1)

    @pl.when(k == pl.num_programs(1) - 1)
    def _finalize():
        sum_ref[0] = acc_ref[...]


def _fuse_kernel(x_ref, att_ref, bias_ref, expand_ref, o_ref):
    x = x_ref[0].astype(jnp.float32)                        # (c_tile, TV)
    a_full = jnp.dot(att_ref[0], expand_ref[...],
                     preferred_element_type=jnp.float32)    # (c_tile, TV)
    y = x * a_full + bias_ref[...]                          # bias: (c_tile, 1)
    o_ref[0] = jnp.maximum(y, 0.0).astype(o_ref.dtype)


def _pick_tv_chunk(C, TV, target_bytes=8 << 20):
    """128-multiple chunk of T*V, preferring one that divides TV evenly."""
    if C * TV * 4 <= target_bytes:
        return TV
    max_chunk = max(128, (target_bytes // (C * 4)) // 128 * 128)
    max_chunk = min(max_chunk, TV)
    for chunk in range(max_chunk // 128 * 128, 0, -128):
        if TV % chunk == 0:
            return int(chunk)
    return int(max_chunk)


def _pick_c_tile(C, TV, target_bytes=8 << 20):
    """Channel tile for the fuse kernel: divisor of C, multiple of 8 (or C)."""
    cands = sorted(set([C] + [d for d in range(8, C, 8) if C % d == 0]))
    fitting = [d for d in cands if d * TV * 4 <= target_bytes]
    return int(max(fitting) if fitting else min(cands))


# --------------------------------------------------------------------------
# Wrapper factory (jitted).  joints/parts are numpy constants baked at trace
# time, so the G / expand matrices constant-fold under jit.
# --------------------------------------------------------------------------
_VMEM_LIMIT = 48 * 1024 * 1024          # safe on v7x (64 MiB), ample on v5e/v6e
_FUSED_VMEM_BUDGET = 36 << 20           # threshold for the single-pass path


def make_part_att(joints_np):
    joints_np = np.asarray(joints_np, dtype=np.int32)

    def fwd(x, params):
        N, C, T, V = x.shape
        TV = T * V
        C4 = params["w1"].shape[0]
        P = params["w2"].shape[0] // C
        x3 = x.reshape(N, C, TV)                            # free reshape in HBM

        # Rough fused-path VMEM need: x + out double-buffered + G buffers.
        fused_bytes = (4 * C * TV + 2 * P * TV + 64 * C) * 4

        if fused_bytes <= _FUSED_VMEM_BUDGET:
            # ---------------- fused single-pass path ----------------
            # G[p, t*V + v] = 1 iff joints[v] == p   (trace-time constant)
            g_np = np.zeros((P, TV), dtype=np.float32)
            for v in range(V):
                g_np[joints_np[v], v::V] = 1.0
            g_mat = jnp.asarray(g_np)

            w2pc = params["w2"].reshape(C, P, C4).transpose(1, 0, 2)  # (P,C,C4)
            b2pc = params["b2"].reshape(C, P).T[:, :, None]           # (P,C,1)
            b1col = params["b1"].reshape(C4, 1)
            s2col = params["s2"].reshape(C, 1)
            biascol = params["o2"].reshape(C, 1)

            kernel = functools.partial(_fused_kernel, inv_tv=1.0 / TV, P=P)
            out3 = pl.pallas_call(
                kernel,
                out_shape=jax.ShapeDtypeStruct((N, C, TV), x.dtype),
                grid=(N,),
                in_specs=[
                    pl.BlockSpec((1, C, TV), lambda n: (n, 0, 0)),
                    pl.BlockSpec((C4, C), lambda n: (0, 0)),
                    pl.BlockSpec((C4, 1), lambda n: (0, 0)),
                    pl.BlockSpec((P, C, C4), lambda n: (0, 0, 0)),
                    pl.BlockSpec((P, C, 1), lambda n: (0, 0, 0)),
                    pl.BlockSpec((C, 1), lambda n: (0, 0)),
                    pl.BlockSpec((C, 1), lambda n: (0, 0)),
                    pl.BlockSpec((P, TV), lambda n: (0, 0)),
                ],
                out_specs=pl.BlockSpec((1, C, TV), lambda n: (n, 0, 0)),
                compiler_params=pltpu.CompilerParams(
                    dimension_semantics=("parallel",),
                    vmem_limit_bytes=_VMEM_LIMIT),
                cost_estimate=pl.CostEstimate(
                    flops=int(N * (2 * C * P * TV + 4 * C * TV)),
                    transcendentals=int(N * C * P),
                    bytes_accessed=int(2 * N * C * TV * 4)),
            )(x3, params["w1"], b1col, w2pc, b2pc, s2col, biascol, g_mat)
            return out3.reshape(N, C, T, V)

        # ---------------- fallback: two kernels + XLA glue ----------------
        tv_chunk = _pick_tv_chunk(C, TV)
        K = pl.cdiv(TV, tv_chunk)
        sums = pl.pallas_call(
            functools.partial(_pool_kernel, tv_total=TV, tv_chunk=tv_chunk),
            out_shape=jax.ShapeDtypeStruct((N, C, 1), jnp.float32),
            grid=(N, K),
            in_specs=[pl.BlockSpec((1, C, tv_chunk), lambda n, k: (n, 0, k))],
            out_specs=pl.BlockSpec((1, C, 1), lambda n, k: (n, 0, 0)),
            scratch_shapes=[pltpu.VMEM((C, 1), jnp.float32)],
            compiler_params=pltpu.CompilerParams(
                dimension_semantics=("parallel", "arbitrary"),
                vmem_limit_bytes=_VMEM_LIMIT),
            cost_estimate=pl.CostEstimate(
                flops=int(N * C * TV), transcendentals=0,
                bytes_accessed=int(N * C * TV * 4)),
        )(x3)

        # Tiny batched MLP + grouped softmax + joint gather in XLA (fuses under jit).
        pooled = sums[:, :, 0] * (1.0 / TV)                          # (N, C)
        h = jnp.maximum(pooled @ params["w1"].T + params["b1"][None, :], 0.0)
        logits = (h @ params["w2"].T + params["b2"][None, :]).reshape(N, C, P)
        att = jax.nn.softmax(logits, axis=-1)
        att_j = att[:, :, joints_np]                                 # (N, C, V)
        att_eff = att_j * params["s2"][None, :, None] + 1.0
        bias_col = params["o2"].reshape(C, 1)
        expand = jnp.asarray(np.tile(np.eye(V, dtype=np.float32), (1, T)))

        c_tile = _pick_c_tile(C, TV)
        out3 = pl.pallas_call(
            _fuse_kernel,
            out_shape=jax.ShapeDtypeStruct((N, C, TV), x.dtype),
            grid=(N, C // c_tile),
            in_specs=[
                pl.BlockSpec((1, c_tile, TV), lambda n, c: (n, c, 0)),
                pl.BlockSpec((1, c_tile, V), lambda n, c: (n, c, 0)),
                pl.BlockSpec((c_tile, 1), lambda n, c: (c, 0)),
                pl.BlockSpec((V, TV), lambda n, c: (0, 0)),
            ],
            out_specs=pl.BlockSpec((1, c_tile, TV), lambda n, c: (n, c, 0)),
            compiler_params=pltpu.CompilerParams(
                dimension_semantics=("parallel", "parallel"),
                vmem_limit_bytes=_VMEM_LIMIT),
            cost_estimate=pl.CostEstimate(
                flops=int(2 * N * C * V * TV + 4 * N * C * TV),
                transcendentals=0,
                bytes_accessed=int(2 * N * C * TV * 4)),
        )(x3, att_eff, bias_col, expand)
        return out3.reshape(N, C, T, V)

    return jax.jit(fwd)


# --------------------------------------------------------------------------
# Pure-JAX reference (mirrors the PyTorch forward with inference-mode BN)
# --------------------------------------------------------------------------
def reference(x, raw, joints_np, P, eps=1e-5):
    N, C, T, V = x.shape
    pooled = x.mean(axis=(2, 3))
    h = pooled @ raw["W1"].T + raw["b1"]
    h = (h - raw["m1"]) / jnp.sqrt(raw["v1"] + eps) * raw["g1"] + raw["be1"]
    h = jnp.maximum(h, 0.0)
    logits = (h @ raw["W2"].T + raw["b2"]).reshape(N, C, P)
    att = jax.nn.softmax(logits, axis=-1)
    att_j = att[:, :, jnp.asarray(joints_np)]                     # (N, C, V)
    y = x * att_j[:, :, None, :]
    y = (y - raw["m"][None, :, None, None]) / jnp.sqrt(raw["v"] + eps)[None, :, None, None]
    y = y * raw["g"][None, :, None, None] + raw["be"][None, :, None, None]
    return jnp.maximum(y + x, 0.0)


if __name__ == "__main__":
    # Small shapes consistent with the module.
    N, C, T, V = 2, 8, 16, 20
    parts = [[0, 1, 2, 3], [4, 5, 6, 7], [8, 9, 10, 11],
             [12, 13, 14, 15], [16, 17, 18, 19]]
    P = len(parts)
    C4 = C // 4
    eps = 1e-5

    joints_np = get_corr_joints(parts)

    key = jax.random.PRNGKey(0)
    keys = jax.random.split(key, 13)
    x = jax.random.normal(keys[0], (N, C, T, V), dtype=jnp.float32)

    # Raw parameters (deterministic, synthetic).
    W1 = jax.random.normal(keys[1], (C4, C), dtype=jnp.float32) * 0.3        # conv1 weight
    b1 = jax.random.normal(keys[2], (C4,), dtype=jnp.float32) * 0.1          # conv1 bias
    g1 = 1.0 + 0.1 * jax.random.normal(keys[3], (C4,), dtype=jnp.float32)    # bn1 gamma
    be1 = 0.1 * jax.random.normal(keys[4], (C4,), dtype=jnp.float32)         # bn1 beta
    m1 = 0.1 * jax.random.normal(keys[5], (C4,), dtype=jnp.float32)          # bn1 running mean
    v1 = jnp.abs(jax.random.normal(keys[6], (C4,), dtype=jnp.float32)) + 0.5  # bn1 running var

    W2 = jax.random.normal(keys[7], (C * P, C4), dtype=jnp.float32) * 0.3    # conv2 weight
    b2 = jax.random.normal(keys[8], (C * P,), dtype=jnp.float32) * 0.1       # conv2 bias

    g = 1.0 + 0.1 * jax.random.normal(keys[9], (C,), dtype=jnp.float32)      # bn gamma
    be = 0.1 * jax.random.normal(keys[10], (C,), dtype=jnp.float32)          # bn beta
    m = 0.1 * jax.random.normal(keys[11], (C,), dtype=jnp.float32)           # bn running mean
    v = jnp.abs(jax.random.normal(keys[12], (C,), dtype=jnp.float32)) + 0.5  # bn running var

    raw = dict(W1=W1, b1=b1, g1=g1, be1=be1, m1=m1, v1=v1,
               W2=W2, b2=b2, g=g, be=be, m=m, v=v)

    # -------- fold BN1 into conv1, BN2 into scale/bias --------
    s1 = g1 / jnp.sqrt(v1 + eps)
    o1 = be1 - m1 * s1
    s2 = g / jnp.sqrt(v + eps)
    o2 = be - m * s2
    params = dict(
        w1=W1 * s1[:, None],          # (C4, C)  conv1 weight with BN1 folded
        b1=b1 * s1 + o1,              # (C4,)    conv1 bias with BN1 folded
        w2=W2,                        # (C*P, C4) PyTorch order: row = c*P + p
        b2=b2,                        # (C*P,)
        s2=s2,                        # (C,)     BN2 scale (folded into att)
        o2=o2,                        # (C,)     BN2 bias
    )

    part_att = make_part_att(joints_np)
    out = part_att(x, params)
    out = jax.block_until_ready(out)

    ref = reference(x, raw, joints_np, P, eps=eps)
    assert out.shape == (N, C, T, V)
    np.testing.assert_allclose(np.asarray(out), np.asarray(ref), rtol=1e-4, atol=1e-4)

    print("KERNEL_OK")
</pallas_src>

<mosaic_0001>
module attributes {stable_mosaic.version = 11 : i64} {
  func.func @_fused_kernel(%arg0: i32, %arg1: memref<1x8x320xf32, #tpu.memory_space<vmem>>, %arg2: memref<2x8xf32, #tpu.memory_space<vmem>>, %arg3: memref<2x1xf32, #tpu.memory_space<vmem>>, %arg4: memref<5x8x2xf32, #tpu.memory_space<vmem>>, %arg5: memref<5x8x1xf32, #tpu.memory_space<vmem>>, %arg6: memref<8x1xf32, #tpu.memory_space<vmem>>, %arg7: memref<8x1xf32, #tpu.memory_space<vmem>>, %arg8: memref<5x320xf32, #tpu.memory_space<vmem>>, %arg9: memref<1x8x320xf32, #tpu.memory_space<vmem>>) attributes {dimension_semantics = [#tpu.dimension_semantics<parallel>], iteration_bounds = array<i64: 2>, scalar_prefetch = 0 : i64, scratch_operands = 0 : i64, tpu.core_type = #tpu.core_type<tc>, window_params = [{transform_indices = @transform_0, window_bounds = array<i64: 1, 8, 320>}, {pipeline_mode = #tpu.pipeline_mode<synchronous>, transform_indices = @transform_1, window_bounds = array<i64: 2, 8>}, {pipeline_mode = #tpu.pipeline_mode<synchronous>, transform_indices = @transform_2, window_bounds = array<i64: 2, 1>}, {pipeline_mode = #tpu.pipeline_mode<synchronous>, transform_indices = @transform_3, window_bounds = array<i64: 5, 8, 2>}, {pipeline_mode = #tpu.pipeline_mode<synchronous>, transform_indices = @transform_4, window_bounds = array<i64: 5, 8, 1>}, {pipeline_mode = #tpu.pipeline_mode<synchronous>, transform_indices = @transform_5, window_bounds = array<i64: 8, 1>}, {pipeline_mode = #tpu.pipeline_mode<synchronous>, transform_indices = @transform_6, window_bounds = array<i64: 8, 1>}, {pipeline_mode = #tpu.pipeline_mode<synchronous>, transform_indices = @transform_7, window_bounds = array<i64: 5, 320>}, {transform_indices = @transform_8, window_bounds = array<i64: 1, 8, 320>}]} {
    %c0 = arith.constant 0 : index
    %c0_0 = arith.constant 0 : index
    %c0_1 = arith.constant 0 : index
    %0 = vector.load %arg1[%c0, %c0_0, %c0_1] : memref<1x8x320xf32, #tpu.memory_space<vmem>>, vector<1x8x320xf32>
    %1 = vector.shape_cast %0 : vector<1x8x320xf32> to vector<8x320xf32>
    %cst = arith.constant dense<0.000000e+00> : vector<8xf32>
    %2 = vector.multi_reduction <add>, %1, %cst [1] : vector<8x320xf32> to vector<8xf32>
    %3 = vector.shape_cast %2 : vector<8xf32> to vector<8x1xf32>
    %cst_2 = arith.constant 3.125000e-03 : f32
    %4 = vector.broadcast %cst_2 : f32 to vector<8x1xf32>
    %5 = arith.mulf %3, %4 : vector<8x1xf32>
    %c0_3 = arith.constant 0 : index
    %c0_4 = arith.constant 0 : index
    %6 = vector.load %arg2[%c0_3, %c0_4] : memref<2x8xf32, #tpu.memory_space<vmem>>, vector<2x8xf32>
    %cst_5 = arith.constant dense<0.000000e+00> : vector<2x1xf32>
    %7 = tpu.matmul %6, %5, %cst_5 {dimension_numbers = #tpu.dot_dimension_numbers<[1], [0], [0], [1], [0, 0, 1, 1], [], []>} : vector<2x8xf32>, vector<8x1xf32>, vector<2x1xf32> -> vector<2x1xf32>
    %c0_6 = arith.constant 0 : index
    %c0_7 = arith.constant 0 : index
    %8 = vector.load %arg3[%c0_6, %c0_7] : memref<2x1xf32, #tpu.memory_space<vmem>>, vector<2x1xf32>
    %9 = arith.addf %7, %8 : vector<2x1xf32>
    %cst_8 = arith.constant 0.000000e+00 : f32
    %10 = vector.broadcast %cst_8 : f32 to vector<2x1xf32>
    %11 = arith.maximumf %9, %10 : vector<2x1xf32>
    %c0_9 = arith.constant 0 : index
    %c0_10 = arith.constant 0 : index
    %c0_11 = arith.constant 0 : index
    %12 = vector.load %arg4[%c0_9, %c0_10, %c0_11] : memref<5x8x2xf32, #tpu.memory_space<vmem>>, vector<1x8x2xf32>
    %13 = vector.shape_cast %12 : vector<1x8x2xf32> to vector<8x2xf32>
    %cst_12 = arith.constant dense<0.000000e+00> : vector<8x1xf32>
    %14 = tpu.matmul %13, %11, %cst_12 {dimension_numbers = #tpu.dot_dimension_numbers<[1], [0], [0], [1], [0, 0, 1, 1], [], []>} : vector<8x2xf32>, vector<2x1xf32>, vector<8x1xf32> -> vector<8x1xf32>
    %c0_13 = arith.constant 0 : index
    %c0_14 = arith.constant 0 : index
    %c0_15 = arith.constant 0 : index
    %15 = vector.load %arg5[%c0_13, %c0_14, %c0_15] : memref<5x8x1xf32, #tpu.memory_space<vmem>>, vector<1x8x1xf32>
    %16 = vector.shape_cast %15 : vector<1x8x1xf32> to vector<8x1xf32>
    %17 = arith.addf %14, %16 : vector<8x1xf32>
    %c1 = arith.constant 1 : index
    %c0_16 = arith.constant 0 : index
    %c0_17 = arith.constant 0 : index
    %18 = vector.load %arg4[%c1, %c0_16, %c0_17] : memref<5x8x2xf32, #tpu.memory_space<vmem>>, vector<1x8x2xf32>
    %19 = vector.shape_cast %18 : vector<1x8x2xf32> to vector<8x2xf32>
    %cst_18 = arith.constant dense<0.000000e+00> : vector<8x1xf32>
    %20 = tpu.matmul %19, %11, %cst_18 {dimension_numbers = #tpu.dot_dimension_numbers<[1], [0], [0], [1], [0, 0, 1, 1], [], []>} : vector<8x2xf32>, vector<2x1xf32>, vector<8x1xf32> -> vector<8x1xf32>
    %c1_19 = arith.constant 1 : index
    %c0_20 = arith.constant 0 : index
    %c0_21 = arith.constant 0 : index
    %21 = vector.load %arg5[%c1_19, %c0_20, %c0_21] : memref<5x8x1xf32, #tpu.memory_space<vmem>>, vector<1x8x1xf32>
    %22 = vector.shape_cast %21 : vector<1x8x1xf32> to vector<8x1xf32>
    %23 = arith.addf %20, %22 : vector<8x1xf32>
    %c2 = arith.constant 2 : index
    %c0_22 = arith.constant 0 : index
    %c0_23 = arith.constant 0 : index
    %24 = vector.load %arg4[%c2, %c0_22, %c0_23] : memref<5x8x2xf32, #tpu.memory_space<vmem>>, vector<1x8x2xf32>
    %25 = vector.shape_cast %24 : vector<1x8x2xf32> to vector<8x2xf32>
    %cst_24 = arith.constant dense<0.000000e+00> : vector<8x1xf32>
    %26 = tpu.matmul %25, %11, %cst_24 {dimension_numbers = #tpu.dot_dimension_numbers<[1], [0], [0], [1], [0, 0, 1, 1], [], []>} : vector<8x2xf32>, vector<2x1xf32>, vector<8x1xf32> -> vector<8x1xf32>
    %c2_25 = arith.constant 2 : index
    %c0_26 = arith.constant 0 : index
    %c0_27 = arith.constant 0 : index
    %27 = vector.load %arg5[%c2_25, %c0_26, %c0_27] : memref<5x8x1xf32, #tpu.memory_space<vmem>>, vector<1x8x1xf32>
    %28 = vector.shape_cast %27 : vector<1x8x1xf32> to vector<8x1xf32>
    %29 = arith.addf %26, %28 : vector<8x1xf32>
    %c3 = arith.constant 3 : index
    %c0_28 = arith.constant 0 : index
    %c0_29 = arith.constant 0 : index
    %30 = vector.load %arg4[%c3, %c0_28, %c0_29] : memref<5x8x2xf32, #tpu.memory_space<vmem>>, vector<1x8x2xf32>
    %31 = vector.shape_cast %30 : vector<1x8x2xf32> to vector<8x2xf32>
    %cst_30 = arith.constant dense<0.000000e+00> : vector<8x1xf32>
    %32 = tpu.matmul %31, %11, %cst_30 {dimension_numbers = #tpu.dot_dimension_numbers<[1], [0], [0], [1], [0, 0, 1, 1], [], []>} : vector<8x2xf32>, vector<2x1xf32>, vector<8x1xf32> -> vector<8x1xf32>
    %c3_31 = arith.constant 3 : index
    %c0_32 = arith.constant 0 : index
    %c0_33 = arith.constant 0 : index
    %33 = vector.load %arg5[%c3_31, %c0_32, %c0_33] : memref<5x8x1xf32, #tpu.memory_space<vmem>>, vector<1x8x1xf32>
    %34 = vector.shape_cast %33 : vector<1x8x1xf32> to vector<8x1xf32>
    %35 = arith.addf %32, %34 : vector<8x1xf32>
    %c4 = arith.constant 4 : index
    %c0_34 = arith.constant 0 : index
    %c0_35 = arith.constant 0 : index
    %36 = vector.load %arg4[%c4, %c0_34, %c0_35] : memref<5x8x2xf32, #tpu.memory_space<vmem>>, vector<1x8x2xf32>
    %37 = vector.shape_cast %36 : vector<1x8x2xf32> to vector<8x2xf32>
    %cst_36 = arith.constant dense<0.000000e+00> : vector<8x1xf32>
    %38 = tpu.matmul %37, %11, %cst_36 {dimension_numbers = #tpu.dot_dimension_numbers<[1], [0], [0], [1], [0, 0, 1, 1], [], []>} : vector<8x2xf32>, vector<2x1xf32>, vector<8x1xf32> -> vector<8x1xf32>
    %c4_37 = arith.constant 4 : index
    %c0_38 = arith.constant 0 : index
    %c0_39 = arith.constant 0 : index
    %39 = vector.load %arg5[%c4_37, %c0_38, %c0_39] : memref<5x8x1xf32, #tpu.memory_space<vmem>>, vector<1x8x1xf32>
    %40 = vector.shape_cast %39 : vector<1x8x1xf32> to vector<8x1xf32>
    %41 = arith.addf %38, %40 : vector<8x1xf32>
    %42 = tpu.concatenate %17, %23, %29, %35, %41 in 1 : vector<8x1xf32>, vector<8x1xf32>, vector<8x1xf32>, vector<8x1xf32>, vector<8x1xf32> -> vector<8x5xf32>
    %cst_40 = arith.constant dense<0xFF800000> : vector<8xf32>
    %43 = vector.multi_reduction <maximumf>, %42, %cst_40 [1] : vector<8x5xf32> to vector<8xf32>
    %44 = vector.shape_cast %43 : vector<8xf32> to vector<8x1xf32>
    %45 = vector.broadcast %44 : vector<8x1xf32> to vector<8x5xf32>
    %46 = arith.subf %42, %45 : vector<8x5xf32>
    %47 = math.exp %46 : vector<8x5xf32>
    %cst_41 = arith.constant dense<0.000000e+00> : vector<8xf32>
    %48 = vector.multi_reduction <add>, %47, %cst_41 [1] : vector<8x5xf32> to vector<8xf32>
    %49 = vector.shape_cast %48 : vector<8xf32> to vector<8x1xf32>
    %50 = vector.broadcast %49 : vector<8x1xf32> to vector<8x5xf32>
    %51 = arith.divf %47, %50 : vector<8x5xf32>
    %c0_42 = arith.constant 0 : index
    %c0_43 = arith.constant 0 : index
    %52 = vector.load %arg6[%c0_42, %c0_43] : memref<8x1xf32, #tpu.memory_space<vmem>>, vector<8x1xf32>
    %53 = vector.broadcast %52 : vector<8x1xf32> to vector<8x5xf32>
    %54 = arith.mulf %51, %53 : vector<8x5xf32>
    %c0_44 = arith.constant 0 : index
    %c0_45 = arith.constant 0 : index
    %55 = vector.load %arg8[%c0_44, %c0_45] : memref<5x320xf32, #tpu.memory_space<vmem>>, vector<5x320xf32>
    %cst_46 = arith.constant dense<0.000000e+00> : vector<8x320xf32>
    %56 = tpu.matmul %54, %55, %cst_46 {dimension_numbers = #tpu.dot_dimension_numbers<[1], [0], [0], [1], [0, 0, 1, 1], [], []>} : vector<8x5xf32>, vector<5x320xf32>, vector<8x320xf32> -> vector<8x320xf32>
    %cst_47 = arith.constant 1.000000e+00 : f32
    %57 = vector.broadcast %cst_47 : f32 to vector<8x320xf32>
    %58 = arith.addf %56, %57 : vector<8x320xf32>
    %59 = arith.mulf %1, %58 : vector<8x320xf32>
    %c0_48 = arith.constant 0 : index
    %c0_49 = arith.constant 0 : index
    %60 = vector.load %arg7[%c0_48, %c0_49] : memref<8x1xf32, #tpu.memory_space<vmem>>, vector<8x1xf32>
    %61 = vector.broadcast %60 : vector<8x1xf32> to vector<8x320xf32>
    %62 = arith.addf %59, %61 : vector<8x320xf32>
    %cst_50 = arith.constant 0.000000e+00 : f32
    %63 = vector.broadcast %cst_50 : f32 to vector<8x320xf32>
    %64 = arith.maximumf %62, %63 : vector<8x320xf32>
    %c0_51 = arith.constant 0 : index
    %c0_52 = arith.constant 0 : index
    %c0_53 = arith.constant 0 : index
    %65 = vector.load %arg9[%c0_51, %c0_52, %c0_53] : memref<1x8x320xf32, #tpu.memory_space<vmem>>, vector<1x8x320xf32>
    %66 = vector.shape_cast %65 : vector<1x8x320xf32> to vector<8x320xf32>
    %67 = vector.shape_cast %64 : vector<8x320xf32> to vector<1x8x320xf32>
    tpu.vector_store %arg9[%c0_51, %c0_52, %c0_53], %67 {strides = array<i32>} : memref<1x8x320xf32, #tpu.memory_space<vmem>>, vector<1x8x320xf32>,
    return
  }
  func.func @transform_0(%arg0: i32) -> (i32, i32, i32) {
    %c0_i32 = arith.constant 0 : i32
    %c0_i32_0 = arith.constant 0 : i32
    %c0_i32_1 = arith.constant 0 : i32
    return %arg0, %c0_i32, %c0_i32_0 : i32, i32, i32
  }
  func.func @transform_1(%arg0: i32) -> (i32, i32) {
    %c0_i32 = arith.constant 0 : i32
    %c0_i32_0 = arith.constant 0 : i32
    %c0_i32_1 = arith.constant 0 : i32
    return %c0_i32, %c0_i32_0 : i32, i32
  }
  func.func @transform_2(%arg0: i32) -> (i32, i32) {
    %c0_i32 = arith.constant 0 : i32
    %c0_i32_0 = arith.constant 0 : i32
    %c0_i32_1 = arith.constant 0 : i32
    return %c0_i32, %c0_i32_0 : i32, i32
  }
  func.func @transform_3(%arg0: i32) -> (i32, i32, i32) {
    %c0_i32 = arith.constant 0 : i32
    %c0_i32_0 = arith.constant 0 : i32
    %c0_i32_1 = arith.constant 0 : i32
    %c0_i32_2 = arith.constant 0 : i32
    return %c0_i32, %c0_i32_0, %c0_i32_1 : i32, i32, i32
  }
  func.func @transform_4(%arg0: i32) -> (i32, i32, i32) {
    %c0_i32 = arith.constant 0 : i32
    %c0_i32_0 = arith.constant 0 : i32
    %c0_i32_1 = arith.constant 0 : i32
    %c0_i32_2 = arith.constant 0 : i32
    return %c0_i32, %c0_i32_0, %c0_i32_1 : i32, i32, i32
  }
  func.func @transform_5(%arg0: i32) -> (i32, i32) {
    %c0_i32 = arith.constant 0 : i32
    %c0_i32_0 = arith.constant 0 : i32
    %c0_i32_1 = arith.constant 0 : i32
    return %c0_i32, %c0_i32_0 : i32, i32
  }
  func.func @transform_6(%arg0: i32) -> (i32, i32) {
    %c0_i32 = arith.constant 0 : i32
    %c0_i32_0 = arith.constant 0 : i32
    %c0_i32_1 = arith.constant 0 : i32
    return %c0_i32, %c0_i32_0 : i32, i32
  }
  func.func @transform_7(%arg0: i32) -> (i32, i32) {
    %c0_i32 = arith.constant 0 : i32
    %c0_i32_0 = arith.constant 0 : i32
    %c0_i32_1 = arith.constant 0 : i32
    return %c0_i32, %c0_i32_0 : i32, i32
  }
  func.func @transform_8(%arg0: i32) -> (i32, i32, i32) {
    %c0_i32 = arith.constant 0 : i32
    %c0_i32_0 = arith.constant 0 : i32
    %c0_i32_1 = arith.constant 0 : i32
    return %arg0, %c0_i32, %c0_i32_0 : i32, i32, i32
  }
}

</mosaic_0001>

<bundles_post_ra>
// kernel: fwd.1
= control target key start
LH: loop header
LB: loop body
LE: loop exit
PB: predicated region body
PF: predicated region fallthrough
CT: control target
= control target key end

     0   :  { %s1217_s27 = smov 0   ;;  %s1328_s0 = inlined_call_operand.vmem [shape: f32[2,8,320], index: 0, kind: input, shape index: {}]   ;;  %s1329_s1 = inlined_call_operand.vmem [shape: f32[2,8], index: 1, kind: input, shape index: {}]   ;;  %s1330_s2 = inlined_call_operand.vmem [shape: f32[2,1], index: 2, kind: input, shape index: {}]   ;;  %s1331_s3 = inlined_call_operand.vmem [shape: f32[5,8,2], index: 3, kind: input, shape index: {}]   ;;  %s1332_s4 = inlined_call_operand.vmem [shape: f32[5,8,1], index: 4, kind: input, shape index: {}]   ;;  %s1333_s5 = inlined_call_operand.vmem [shape: f32[8,1], index: 5, kind: input, shape index: {}]   ;;  %s1334_s6 = inlined_call_operand.vmem [shape: f32[8,1], index: 6, kind: input, shape index: {}]   ;;  %s1335_s7 = inlined_call_operand.vmem [shape: f32[5,320], index: 7, kind: input, shape index: {}]   ;;  %s1336_s8 = inlined_call_operand.vmem [shape: f32[2,8,320], index: 8, kind: output, shape index: {}]  }
   0x1 LB: > { %s1053_s28 = sadd.s32 4294967295, %s1163_s27   ;;  %p1057_p0 = scmp.ge.s32.totalorder %s1163_s27, 1  ;;  %s1163_s27 = sphi %s1217_s27, %s18_s27  }
   0x2   : > { %p262_p1 = scmp.lt.s32.totalorder %s1163_s27, 3 }
   0x4   : > { %p263_p2 = pnand %p1057_p0, %p262_p1 }
   0x5   : > { %p296_p3 = scmp.lt.s32.totalorder (!%p263_p2), %s1053_s28, 1  ;;  %vm310_vm0 = vcmask (!%p263_p2), 523264   ;;  %v1165_v6 = vmov (!%p263_p2), 0.0   ;;  %vm1166_vm1 = vmmov (!%p263_p2), 0   ;;  %v316_v9 = vld [vmem:[%s1329_s1] sm:$0x3] (!%p263_p2) }
   0x6   : > { %266 = sbr.rel (%p263_p2) target bundleno = 1264 (0x4f0), region = 52  ;;  %1100 = vmatprep.subr.mxu0 (!%p263_p2), %v1165_v6  ;;  %1105 = vmatprep.subr.mxu1 (!%p263_p2), %v1165_v6  ;;  %vm318_vm2 = vcmask (!%p263_p2), 64512   ;;  %v317_v10 = vld [vmem:[%s1330_s2] sm:$0x3] (!%p263_p2)  ;;  %vm399_vm3 = vcmask (!%p263_p2), 1041408   ;;  %vm395_vm4 = vcmask (!%p263_p2), 15360  }
   0x7   : > { %1102 = vmatprep.mubr.msk.f32.mxu0 (!%p263_p2), %vm1166_vm1, %v1165_v6  ;;  %1107 = vmatprep.mubr.msk.f32.mxu1 (!%p263_p2), %vm1166_vm1, %v1165_v6  ;;  %v393_v15 = vld [vmem:[%s1331_s3] sm:$0xff] (!%p263_p2)  ;;  %v1063_v16 = vld [vmem:[%s1331_s3 + $0x8] sm:$0xff] (!%p263_p2)  ;;  %v1067_v17 = vld [vmem:[%s1331_s3 + $0x10] sm:$0xff] (!%p263_p2)  ;;  %s1168_s13 = smov (!%p263_p2), 2   ;;  %s1169_s16 = smov (!%p263_p2), 3   ;;  %vm797_vm5 = vcmask (!%p263_p2), 7168  }
   0x8   : > { %v1071_v18 = vld [vmem:[%s1331_s3 + $0x18] sm:$0xff] (!%p263_p2)  ;;  %v1075_v19 = vld [vmem:[%s1331_s3 + $0x20] sm:$0xff] (!%p263_p2)  ;;  %v1064_v20 = vld [vmem:[%s1332_s4 + $0x8] sm:$0xff] (!%p263_p2)  ;;  %s1170_s17 = smov (!%p263_p2), 4   ;;  %vm800_vm6 = vcmask (!%p263_p2), 23552   ;;  %vm802_vm7 = vcmask (!%p263_p2), 31744  }
   0x9   : > { %v1068_v26 = vld [vmem:[%s1332_s4 + $0x10] sm:$0xff] (!%p263_p2)  ;;  %v1072_v28 = vld [vmem:[%s1332_s4 + $0x18] sm:$0xff] (!%p263_p2)  ;;  %v1076_v34 = vld [vmem:[%s1332_s4 + $0x20] sm:$0xff] (!%p263_p2)  ;;  %vm804_vm8 = vcmask (!%p263_p2), 39936   ;;  %v1171_v50 = vmov (!%p263_p2), 0   ;;  %vm829_vm9 = vcmask (!%p263_p2), 1044480  }
   0xa   : > { %v394_v39 = vld [vmem:[%s1332_s4] sm:$0xff] (!%p263_p2)  ;;  %1151 = vset.pattern.permute.xlu1 (!%p263_p2), %v1171_v50  ;;  %1152 = vset.pattern.permute.xlu0 (!%p263_p2), %v1171_v50  ;;  %v824_v56 = vld [vmem:[%s1335_s7 + $0x8] sm:$0x1f] (!%p263_p2)  ;;  %v825_v58 = vld [vmem:[%s1335_s7 + $0x10] sm:$0x1f] (!%p263_p2) }
   0xb   : > { %v816_v49 = vld [vmem:[%s1333_s5] sm:$0xff] (!%p263_p2) }
   0xc   : > { %v823_v57 = vld [vmem:[%s1335_s7] sm:$0x1f] (!%p263_p2) }
   0xd   : > { %s1338_s28 = smov (!%p296_p3, %s1053_s28), 1  ;;  %v983_v59 = vld [vmem:[%s1334_s6] sm:$0xff] }
   0xe   : > { %s1135_s29 = smul.u32 24, %s1338_s28 }
  0x10   : > { %s300_s10 = scalar_lea.vmem %s1328_s0, %s1135_s29 }
  0x11   : > { %v1233_v0 = vld [vmem:[%s300_s10] sm:$0xff]  ;;  %v1235_v1 = vld [vmem:[%s300_s10 + $0x8] sm:$0xff]  ;;  %v1237_v2 = vld [vmem:[%s300_s10 + $0x10] sm:$0xff]  ;;  %s1167_s10 = smov 1  }
  0x12   : > { %v309_v3 = vadd.f32 %v1235_v1, %v1233_v0  ;;  %v311_v4 = vsel %vm310_vm0, %v1237_v2, 0.0 }
  0x14   : > { %v312_v5 = vadd.f32 %v311_v4, %v309_v3 }
  0x16   : > { %313 = vadd.xlane.f32.xlu0 %v312_v5 }
  0xa3   : > { %v314_v7 = vpop.xlane.xlu0 %313 }
  0xa4   : > { %v315_v8 = vmul.f32 0.003125, %v314_v7 }
  0xa6   : > { %1101 = vmatpush3.msra.mxu0 %v315_v8 }
  0xa7   : > { %1103 = vmatmul.mubr.msk.f32.vlgmr.msra.gmra.mrb[0].mxu0 %vm318_vm2, %v316_v9  ;;  %1110 = vmatprep.subr.mxu0 %v1165_v6 }
  0xa8   : > { %1112 = vmatprep.mubr.msk.f32.mxu0 %vm1166_vm1, %v1165_v6 }
 0x17a   : > { %v388_v11 = vpop.f32.mrb[0].mxu0 }
 0x17b   : > { %v389_v12 = vadd.f32 %v388_v11, %v317_v10  ;;  %v1104_v13 = vpop.f32.mrb[1].mxu0 }
 0x17d   : > { %v392_v14 = vmax.f32 %v389_v12, 0.0 }
 0x17f   : > { %1106 = vmatpush3.msk.msra.mxu1 %vm399_vm3, %v392_v14  ;;  %1111 = vmatpush3.msk.msra.mxu0 %vm399_vm3, %v392_v14 }
 0x180   : > { %1108 = vmatmul.mubr.msk.f32.vlgmr.msra.gmra.mrb[0].mxu1 %vm395_vm4, %v393_v15  ;;  %1113 = vmatmul.mubr.msk.f32.vlgmr.msra.gmra.mrb[2].mxu0 %vm395_vm4, %v1063_v16 }
 0x181   : > { %1115 = vmatprep.subr.mxu1 %v1165_v6  ;;  %1120 = vmatprep.subr.mxu0 %v1165_v6 }
 0x182   : > { %1116 = vmatpush3.msk.msra.mxu1 %vm399_vm3, %v392_v14  ;;  %1121 = vmatpush3.msk.msra.mxu0 %vm399_vm3, %v392_v14 }
 0x183   : > { %1117 = vmatprep.mubr.msk.f32.mxu1 %vm1166_vm1, %v1165_v6  ;;  %1125 = vmatprep.subr.mxu1 %v1165_v6 }
 0x184   : > { %1118 = vmatmul.mubr.msk.f32.vlgmr.msra.gmra.mrb[2].mxu1 %vm395_vm4, %v1067_v17  ;;  %1122 = vmatprep.mubr.msk.f32.mxu0 %vm1166_vm1, %v1165_v6 }
 0x185   : > { %1126 = vmatpush3.msk.msra.mxu1 %vm399_vm3, %v392_v14  ;;  %1123 = vmatmul.mubr.msk.f32.vlgmr.msra.gmra.mrb[4].mxu0 %vm395_vm4, %v1071_v18 }
 0x186   : > { %1127 = vmatprep.mubr.msk.f32.mxu1 %vm1166_vm1, %v1165_v6  ;;  %1130 = vmatprep.subr.mxu1 %v1165_v6 }
 0x187   : > { %903 = vmatprep.mubr.f32.mxu0 %v1165_v6  ;;  %1079 = vmatprep.subr.msk.mxu0 %vm829_vm9, %v824_v56 }
 0x188   : > { %1128 = vmatmul.mubr.msk.f32.vlgmr.msra.gmra.mrb[4].mxu1 %vm395_vm4, %v1075_v19  ;;  %1080 = vmatpush1.msk.msra.mxu0 %vm829_vm9, %v823_v57 }
 0x189   : > { %1132 = vmatprep.mubr.msk.f32.mxu1 %vm1166_vm1, %v1165_v6  ;;  %1131 = vmatpush3.msk.msra.mxu1 %vm829_vm9, %v825_v58 }
 0x253   : > { %v469_v21 = vpop.f32.mrb[0].mxu1  ;;  %v546_v22 = vpop.f32.mrb[2].mxu0 }
 0x254   : > { %v547_v23 = vadd.f32 %v1064_v20, %v546_v22  ;;  %v1109_v24 = vpop.f32.mrb[1].mxu1  ;;  %v1114_v25 = vpop.f32.mrb[3].mxu0  ;;  %v470_v41 = vadd.f32 %v469_v21, %v394_v39 }
 0x256   : > { %782 = vrot.lane.b32.xlu0 %v547_v23, %s1167_s10 }
 0x257   : > { %v623_v27 = vpop.f32.mrb[2].mxu1 }
 0x258   : > { %v624_v29 = vadd.f32 %v1068_v26, %v623_v27  ;;  %v1119_v30 = vpop.f32.mrb[3].mxu1  ;;  %v700_v31 = vpop.f32.mrb[4].mxu0 }
 0x259   : > { %v1124_v32 = vpop.f32.mrb[5].mxu0  ;;  %v701_v33 = vadd.f32 %v1072_v28, %v700_v31 }
 0x25a   : > { %786 = vrot.lane.b32.xlu1 %v624_v29, %s1168_s13  ;;  %s305_s13 = scalar_lea.vmem %s1336_s8, %s1135_s29 }
 0x25b   : > { %v777_v35 = vpop.f32.mrb[4].mxu1 }
 0x25c   : > { %v1129_v36 = vpop.f32.mrb[5].mxu1  ;;  %v778_v37 = vadd.f32 %v1076_v34, %v777_v35 }
 0x25e   : > { %790 = vrot.lane.b32.xlu1 %v701_v33, %s1169_s16 }
 0x262   : > { %794 = vrot.lane.b32.xlu1 %v778_v37, %s1170_s17 }
 0x2c8   : > { %v783_v40 = vpop.permute.xlu0 %782 }
 0x2c9   : > { %v798_v43 = vsel %vm797_vm5, %v470_v41, %v783_v40 }
 0x2cc   : > { %v787_v38 = vpop.permute.xlu1 %786 }
 0x2cd   : > { %v799_v44 = vsel %vm395_vm4, %v798_v43, %v787_v38 }
 0x2d0   : > { %v791_v42 = vpop.permute.xlu1 %790 }
 0x2d1   : > { %v801_v45 = vsel %vm800_vm6, %v799_v44, %v791_v42 }
 0x2d4   : > { %v795_v46 = vpop.permute.xlu1 %794 }
 0x2d5   : > { %v803_v47 = vsel %vm802_vm7, %v801_v45, %v795_v46 }
 0x2d6   : > { %v805_v48 = vsel %vm804_vm8, %v803_v47, -inf }
 0x2d7   : > { %806 = vmax.xlane.f32.xlu1 %v805_v48 }
 0x2e8   : > { %819 = vperm.xlu1 %1151, %v816_v49  }
 0x364   : > { %v807_v51 = vpop.xlane.xlu1 %806 }
 0x365   : > { %v808_v52 = vsub.f32 %v803_v47, %v807_v51 }
 0x367   : > { %v809_v53 = vmul.f32 1.442695, %v808_v52 }
 0x368   : > { %v820_v62 = vpop.permute.xlu1 %819 }
 0x369   : > { %1153 = vpow2.f32 %v809_v53 }
 0x373   : > { %v1154_v54 = vpop.eup %1153 }
 0x374   : > { %v811_v55 = vsel %vm804_vm8, %v1154_v54, 0.0 }
 0x375   : > { %812 = vadd.xlane.f32.xlu0 %v811_v55 }
 0x38b   : > { %986 = vperm.xlu0 %1152, %v983_v59  }
 0x402   : > { %v813_v60 = vpop.xlane.xlu0 %812 }
 0x403   : > { %1155 = vrcp.f32 %v813_v60 }
 0x40a   : > { %v987_v11 = vpop.permute.xlu0 %986 }
 0x40d   : > { %v1156_v61 = vpop.eup %1155 }
 0x40e   : > { %v815_v63 = vmul.f32 %v1156_v61, %v1154_v54 }
 0x410   : > { %v822_v3 = vmul.f32 %v820_v62, %v815_v63 }
 0x412   : > { %1081 = vmatmul.mubr.msk.f32.vlgmr.msra.gmra.mrb[6].mxu0 %vm804_vm8, %v822_v3  ;;  %1133 = vmatmul.mubr.msk.f32.vlgmr.msra.gmra.mrb[6].mxu1 %vm804_vm8, %v822_v3 }
 0x4e5   : > { %v905_v4 = vpop.f32.mrb[6].mxu0  ;;  %v976_v5 = vpop.f32.mrb[6].mxu1 }
 0x4e6   : > { %v906_v6 = vadd.f32 1.0, %v905_v4  ;;  %v977_v7 = vadd.f32 1.0, %v976_v5  ;;  %v907_v8 = vpop.f32.mrb[7].mxu0  ;;  %v1134_v9 = vpop.f32.mrb[7].mxu1 }
 0x4e7   : > { %v908_v10 = vadd.f32 1.0, %v907_v8 }
 0x4e8   : > { %v980_v12 = vmul.f32 %v906_v6, %v1233_v0  ;;  %v982_v13 = vmul.f32 %v977_v7, %v1237_v2 }
 0x4e9   : > { %v981_v14 = vmul.f32 %v908_v10, %v1235_v1 }
 0x4ea   : > { %v989_v15 = vadd.f32 %v987_v11, %v980_v12  ;;  %v991_v16 = vadd.f32 %v987_v11, %v982_v13 }
 0x4eb   : > { %v990_v17 = vadd.f32 %v987_v11, %v981_v14 }
 0x4ec   : > { %v992_v18 = vmax.f32 %v989_v15, 0.0  ;;  %v994_v19 = vmax.f32 %v991_v16, 0.0 }
 0x4ed   : > { %v993_v20 = vmax.f32 %v990_v17, 0.0 }
 0x4ee   : > { %995 = vst [vmem:[%s305_s13] sm:$0xff] %v992_v18  ;;  %997 = vst.msk [vmem:[%s305_s13 + $0x10] sm:$0xff] %vm310_vm0, %v994_v19 }
 0x4ef   : > { %996 = vst [vmem:[%s305_s13 + $0x8] sm:$0xff] %v993_v20 }
 0x4f0 PF: > { %s18_s27 = sadd.s32 1, %s1163_s27  }
 0x4f1   : > { %p15_p4 = scmp.ge.s32.totalorder %s18_s27, 4  }
 0x4f3   :  { %17 = sbr.rel (!%p15_p4) target bundleno = 1 (0x1), region = 90 }

</bundles_post_ra>
